<compile_context>
chip_gen: v7x
topology: tpu7x:2x2x1
jax: 0.10.0
libtpu: 0.0.40
codegen_flags: <defaults>
</compile_context>

<pallas_src>
import jax
import jax.numpy as jnp
from jax import lax
from jax.experimental import pallas as pl
from jax.experimental.pallas import tpu as pltpu

HIDDEN = 64


def _round_up(n, m):
    return ((n + m - 1) // m) * m


def critic_kernel(x_ref, w1_ref, b1_ref, w2_ref, b2_ref, w3_ref, b3_ref, o_ref):
    # One (TB, F_pad) batch tile per grid step; weights are VMEM-resident.
    x = x_ref[...]
    h1 = jnp.dot(x, w1_ref[...], preferred_element_type=jnp.float32) + b1_ref[...]
    h1 = jnp.maximum(h1, 0.0)
    h2 = jnp.dot(h1, w2_ref[...], preferred_element_type=jnp.float32) + b2_ref[...]
    h2 = jnp.maximum(h2, 0.0)
    # Final (64 -> 1) layer: contract the (1, 64) weight row against h2's hidden
    # axis so the result is a lane-dense (1, TB) row -> unmasked stores.
    out = lax.dot_general(
        w3_ref[...], h2,
        dimension_numbers=(((1,), (1,)), ((), ())),
        preferred_element_type=jnp.float32,
    ) + b3_ref[...]
    o_ref[...] = out.astype(o_ref.dtype)


def critic_forward(x, params, *, max_tile=512):
    """Fused critic MLP.

    x:      (B, F) float32
    params: w1 (F,64), b1 (1,64), w2 (64,64), b2 (1,64), w3 (1,64), b3 (1,1)
    returns (B, 1) float32
    """
    w1, b1 = params["w1"], params["b1"]
    w2, b2 = params["w2"], params["b2"]
    w3, b3 = params["w3"], params["b3"]

    B, F = x.shape
    H = w1.shape[1]

    # Lane-align the first matmul's contraction dim (zero padding is exact).
    F_pad = _round_up(max(F, 128), 128)

    # Batch tile: largest multiple of 128 whose double-buffered x tile fits a
    # conservative VMEM budget (v7x: 64 MiB physical / 32 MiB scoped default).
    x_budget = 24 * 1024 * 1024                       # bytes for 2 x buffers
    tb = (x_budget // (2 * F_pad * 4)) // 128 * 128
    TB = int(max(128, min(max_tile, tb, _round_up(B, 128))))
    B_pad = _round_up(B, TB)
    num_tiles = B_pad // TB

    xp = x
    if B_pad != B or F_pad != F:
        xp = jnp.pad(x, ((0, B_pad - B), (0, F_pad - F)))
    w1p = w1 if F_pad == F else jnp.pad(w1, ((0, F_pad - F), (0, 0)))

    resident = lambda shape: pl.BlockSpec(shape, lambda i: (0, 0))

    out_row = pl.pallas_call(
        critic_kernel,
        out_shape=jax.ShapeDtypeStruct((1, B_pad), jnp.float32),
        grid=(num_tiles,),
        in_specs=[
            pl.BlockSpec((TB, F_pad), lambda i: (i, 0)),  # x: tiled over batch
            resident((F_pad, H)),                          # w1
            resident((1, H)),                              # b1
            resident((H, H)),                              # w2
            resident((1, H)),                              # b2
            resident((1, H)),                              # w3 row
            resident((1, 1)),                              # b3
        ],
        out_specs=pl.BlockSpec((1, TB), lambda i: (0, i)),  # lane-dense output
        compiler_params=pltpu.CompilerParams(
            dimension_semantics=("parallel",),   # megacore sharding on v7x
            vmem_limit_bytes=32 * 1024 * 1024,   # headroom above v5e's default
        ),
    )(xp, w1p, b1, w2, b2, w3, b3)

    # (1, B_pad) lane-dense row -> (B, 1) column expected by callers.
    return out_row.reshape(B_pad)[:B].reshape(B, 1)


def init_params(key, feature_dim, hidden=HIDDEN):
    # PyTorch-style uniform init bounds; w1/w2 stored (in, out), w3 as (1, hidden).
    k1, k2, k3, k4, k5, k6 = jax.random.split(key, 6)

    def lin(kw, kb, fan_in, fan_out, as_row=False):
        bound = 1.0 / jnp.sqrt(fan_in)
        w_shape = (fan_out, fan_in) if as_row else (fan_in, fan_out)
        w = jax.random.uniform(kw, w_shape, jnp.float32, -bound, bound)
        b = jax.random.uniform(kb, (1, fan_out), jnp.float32, -bound, bound)
        return w, b

    w1, b1 = lin(k1, k2, feature_dim, hidden)
    w2, b2 = lin(k3, k4, hidden, hidden)
    w3, b3 = lin(k5, k6, hidden, 1, as_row=True)     # (1, hidden), (1, 1)
    return {"w1": w1, "b1": b1, "w2": w2, "b2": b2, "w3": w3, "b3": b3}


def critic_reference(x, p):
    h1 = jnp.maximum(x @ p["w1"] + p["b1"], 0.0)
    h2 = jnp.maximum(h1 @ p["w2"] + p["b2"], 0.0)
    return h2 @ p["w3"].T + p["b3"]


if __name__ == "__main__":
    key = jax.random.PRNGKey(0)
    kx, kp = jax.random.split(key)

    batch, feature_dim = 8, 32
    x = jax.random.normal(kx, (batch, feature_dim), jnp.float32)
    params = init_params(kp, feature_dim)

    out = critic_forward(x, params)
    out = jax.block_until_ready(out)

    ref = critic_reference(x, params)
    assert out.shape == (batch, 1), out.shape
    assert jnp.allclose(out, ref, atol=1e-4, rtol=1e-4), "mismatch vs reference"

    print("KERNEL_OK")
</pallas_src>

<mosaic_0001>
module attributes {stable_mosaic.version = 11 : i64} {
  func.func @critic_kernel(%arg0: i32, %arg1: memref<128x128xf32, #tpu.memory_space<vmem>>, %arg2: memref<128x64xf32, #tpu.memory_space<vmem>>, %arg3: memref<1x64xf32, #tpu.memory_space<vmem>>, %arg4: memref<64x64xf32, #tpu.memory_space<vmem>>, %arg5: memref<1x64xf32, #tpu.memory_space<vmem>>, %arg6: memref<1x64xf32, #tpu.memory_space<vmem>>, %arg7: memref<1x1xf32, #tpu.memory_space<vmem>>, %arg8: memref<1x128xf32, #tpu.memory_space<vmem>>) attributes {dimension_semantics = [#tpu.dimension_semantics<parallel>], iteration_bounds = array<i64: 1>, scalar_prefetch = 0 : i64, scratch_operands = 0 : i64, tpu.core_type = #tpu.core_type<tc>, window_params = [{transform_indices = @transform_0, window_bounds = array<i64: 128, 128>}, {pipeline_mode = #tpu.pipeline_mode<synchronous>, transform_indices = @transform_1, window_bounds = array<i64: 128, 64>}, {pipeline_mode = #tpu.pipeline_mode<synchronous>, transform_indices = @transform_2, window_bounds = array<i64: 1, 64>}, {pipeline_mode = #tpu.pipeline_mode<synchronous>, transform_indices = @transform_3, window_bounds = array<i64: 64, 64>}, {pipeline_mode = #tpu.pipeline_mode<synchronous>, transform_indices = @transform_4, window_bounds = array<i64: 1, 64>}, {pipeline_mode = #tpu.pipeline_mode<synchronous>, transform_indices = @transform_5, window_bounds = array<i64: 1, 64>}, {pipeline_mode = #tpu.pipeline_mode<synchronous>, transform_indices = @transform_6, window_bounds = array<i64: 1, 1>}, {transform_indices = @transform_7, window_bounds = array<i64: 1, 128>}]} {
    %c0 = arith.constant 0 : index
    %c0_0 = arith.constant 0 : index
    %0 = vector.load %arg1[%c0, %c0_0] : memref<128x128xf32, #tpu.memory_space<vmem>>, vector<128x128xf32>
    %c0_1 = arith.constant 0 : index
    %c0_2 = arith.constant 0 : index
    %1 = vector.load %arg2[%c0_1, %c0_2] : memref<128x64xf32, #tpu.memory_space<vmem>>, vector<128x64xf32>
    %cst = arith.constant dense<0.000000e+00> : vector<128x64xf32>
    %2 = tpu.matmul %0, %1, %cst {dimension_numbers = #tpu.dot_dimension_numbers<[1], [0], [0], [1], [0, 0, 1, 1], [], []>} : vector<128x128xf32>, vector<128x64xf32>, vector<128x64xf32> -> vector<128x64xf32>
    %c0_3 = arith.constant 0 : index
    %c0_4 = arith.constant 0 : index
    %3 = vector.load %arg3[%c0_3, %c0_4] : memref<1x64xf32, #tpu.memory_space<vmem>>, vector<1x64xf32>
    %4 = vector.broadcast %3 : vector<1x64xf32> to vector<128x64xf32>
    %5 = arith.addf %2, %4 : vector<128x64xf32>
    %cst_5 = arith.constant 0.000000e+00 : f32
    %6 = vector.broadcast %cst_5 : f32 to vector<128x64xf32>
    %7 = arith.maximumf %5, %6 : vector<128x64xf32>
    %c0_6 = arith.constant 0 : index
    %c0_7 = arith.constant 0 : index
    %8 = vector.load %arg4[%c0_6, %c0_7] : memref<64x64xf32, #tpu.memory_space<vmem>>, vector<64x64xf32>
    %cst_8 = arith.constant dense<0.000000e+00> : vector<128x64xf32>
    %9 = tpu.matmul %7, %8, %cst_8 {dimension_numbers = #tpu.dot_dimension_numbers<[1], [0], [0], [1], [0, 0, 1, 1], [], []>} : vector<128x64xf32>, vector<64x64xf32>, vector<128x64xf32> -> vector<128x64xf32>
    %c0_9 = arith.constant 0 : index
    %c0_10 = arith.constant 0 : index
    %10 = vector.load %arg5[%c0_9, %c0_10] : memref<1x64xf32, #tpu.memory_space<vmem>>, vector<1x64xf32>
    %11 = vector.broadcast %10 : vector<1x64xf32> to vector<128x64xf32>
    %12 = arith.addf %9, %11 : vector<128x64xf32>
    %cst_11 = arith.constant 0.000000e+00 : f32
    %13 = vector.broadcast %cst_11 : f32 to vector<128x64xf32>
    %14 = arith.maximumf %12, %13 : vector<128x64xf32>
    %c0_12 = arith.constant 0 : index
    %c0_13 = arith.constant 0 : index
    %15 = vector.load %arg6[%c0_12, %c0_13] : memref<1x64xf32, #tpu.memory_space<vmem>>, vector<1x64xf32>
    %cst_14 = arith.constant dense<0.000000e+00> : vector<1x128xf32>
    %16 = tpu.matmul %15, %14, %cst_14 {dimension_numbers = #tpu.dot_dimension_numbers<[1], [1], [0], [0], [0, 0, 1, 0], [], []>} : vector<1x64xf32>, vector<128x64xf32>, vector<1x128xf32> -> vector<1x128xf32>
    %c0_15 = arith.constant 0 : index
    %c0_16 = arith.constant 0 : index
    %17 = vector.load %arg7[%c0_15, %c0_16] : memref<1x1xf32, #tpu.memory_space<vmem>>, vector<1x1xf32>
    %18 = vector.broadcast %17 : vector<1x1xf32> to vector<1x128xf32>
    %19 = arith.addf %16, %18 : vector<1x128xf32>
    %c0_17 = arith.constant 0 : index
    %c0_18 = arith.constant 0 : index
    %20 = vector.load %arg8[%c0_17, %c0_18] : memref<1x128xf32, #tpu.memory_space<vmem>>, vector<1x128xf32>
    tpu.vector_store %arg8[%c0_17, %c0_18], %19 {strides = array<i32>} : memref<1x128xf32, #tpu.memory_space<vmem>>, vector<1x128xf32>,
    return
  }
  func.func @transform_0(%arg0: i32) -> (i32, i32) {
    %c0_i32 = arith.constant 0 : i32
    %c0_i32_0 = arith.constant 0 : i32
    return %arg0, %c0_i32 : i32, i32
  }
  func.func @transform_1(%arg0: i32) -> (i32, i32) {
    %c0_i32 = arith.constant 0 : i32
    %c0_i32_0 = arith.constant 0 : i32
    %c0_i32_1 = arith.constant 0 : i32
    return %c0_i32, %c0_i32_0 : i32, i32
  }
  func.func @transform_2(%arg0: i32) -> (i32, i32) {
    %c0_i32 = arith.constant 0 : i32
    %c0_i32_0 = arith.constant 0 : i32
    %c0_i32_1 = arith.constant 0 : i32
    return %c0_i32, %c0_i32_0 : i32, i32
  }
  func.func @transform_3(%arg0: i32) -> (i32, i32) {
    %c0_i32 = arith.constant 0 : i32
    %c0_i32_0 = arith.constant 0 : i32
    %c0_i32_1 = arith.constant 0 : i32
    return %c0_i32, %c0_i32_0 : i32, i32
  }
  func.func @transform_4(%arg0: i32) -> (i32, i32) {
    %c0_i32 = arith.constant 0 : i32
    %c0_i32_0 = arith.constant 0 : i32
    %c0_i32_1 = arith.constant 0 : i32
    return %c0_i32, %c0_i32_0 : i32, i32
  }
  func.func @transform_5(%arg0: i32) -> (i32, i32) {
    %c0_i32 = arith.constant 0 : i32
    %c0_i32_0 = arith.constant 0 : i32
    %c0_i32_1 = arith.constant 0 : i32
    return %c0_i32, %c0_i32_0 : i32, i32
  }
  func.func @transform_6(%arg0: i32) -> (i32, i32) {
    %c0_i32 = arith.constant 0 : i32
    %c0_i32_0 = arith.constant 0 : i32
    %c0_i32_1 = arith.constant 0 : i32
    return %c0_i32, %c0_i32_0 : i32, i32
  }
  func.func @transform_7(%arg0: i32) -> (i32, i32) {
    %c0_i32 = arith.constant 0 : i32
    %c0_i32_0 = arith.constant 0 : i32
    return %c0_i32, %arg0 : i32, i32
  }
}

</mosaic_0001>

<bundles_post_ra>
// kernel: tpu_custom_call.1
= control target key start
LH: loop header
LB: loop body
LE: loop exit
PB: predicated region body
PF: predicated region fallthrough
CT: control target
= control target key end

     0   :  { %s1186_s0 = inlined_call_operand.vmem [shape: f32[128,128], index: 0, kind: input, shape index: {}]   ;;  %s1187_s1 = inlined_call_operand.vmem [shape: f32[128,64], index: 1, kind: input, shape index: {}]   ;;  %s1188_s2 = inlined_call_operand.vmem [shape: f32[1,64], index: 2, kind: input, shape index: {}]   ;;  %s1189_s3 = inlined_call_operand.vmem [shape: f32[64,64], index: 3, kind: input, shape index: {}]   ;;  %s1190_s4 = inlined_call_operand.vmem [shape: f32[1,64], index: 4, kind: input, shape index: {}]   ;;  %s1191_s5 = inlined_call_operand.vmem [shape: f32[1,64], index: 5, kind: input, shape index: {}]   ;;  %s1192_s6 = inlined_call_operand.<no memory space> [shape: f32[1,1], index: 6, kind: input, shape index: {}]   ;;  %s1193_s7 = inlined_call_operand.hbm [shape: f32[1,128], index: 7, kind: output, shape index: {}]  }
   0x1   :  { %v12_v0 = vstv %s1192_s6 }
   0x2   :  { %13 = vst [vmem:[#allocation2] sm:$0x1] %v12_v0 }
   0x3   :  { %v45_v1 = vld [vmem:[%s1187_s1] sm:$0xff]  ;;  %v46_v2 = vld [vmem:[%s1187_s1 + $0x8] sm:$0xff]  ;;  %v47_v3 = vld [vmem:[%s1187_s1 + $0x10] sm:$0xff] }
   0x4   :  { %v840_v4 = vpack.c.bf16 %v46_v2, %v45_v1  ;;  %v48_v5 = vld [vmem:[%s1187_s1 + $0x18] sm:$0xff]  ;;  %v49_v7 = vld [vmem:[%s1187_s1 + $0x20] sm:$0xff]  ;;  %v50_v8 = vld [vmem:[%s1187_s1 + $0x28] sm:$0xff] }
   0x5   :  { %v844_v6 = vpack.c.bf16 %v48_v5, %v47_v3  ;;  %v848_v9 = vpack.c.bf16 %v50_v8, %v49_v7  ;;  %v29_v10 = vld [vmem:[%s1186_s0] sm:$0xff]  ;;  %v51_v11 = vld [vmem:[%s1187_s1 + $0x30] sm:$0xff]  ;;  %v52_v12 = vld [vmem:[%s1187_s1 + $0x38] sm:$0xff] }
   0x6   :  { %841 = vmatprep.subr.bf16.mxu0 %v840_v4  ;;  %741 = vmatprep.mubr.f32.mxu0 %v29_v10  ;;  %v852_v13 = vpack.c.bf16 %v52_v12, %v51_v11  ;;  %v53_v14 = vld [vmem:[%s1187_s1 + $0x40] sm:$0xff]  ;;  %v54_v15 = vld [vmem:[%s1187_s1 + $0x48] sm:$0xff]  ;;  %v231_v18 = vld [vmem:[%s1189_s3 + $0x10] sm:$0xff] }
   0x7   :  { %843 = vmatpush3.bf16.msra.mxu0 %v840_v4  ;;  %v229_v16 = vld [vmem:[%s1189_s3] sm:$0xff]  ;;  %v230_v17 = vld [vmem:[%s1189_s3 + $0x8] sm:$0xff]  ;;  %v232_v19 = vld [vmem:[%s1189_s3 + $0x18] sm:$0xff] }
   0x8   :  { %845 = vmatprep.subr.bf16.mxu0 %v844_v6  ;;  %v872_v20 = vpack.c.bf16 %v230_v17, %v229_v16  ;;  %v876_v21 = vpack.c.bf16 %v232_v19, %v231_v18 }
   0xb   :  { %847 = vmatpush3.bf16.msra.mxu0 %v844_v6 }
   0xc   :  { %849 = vmatprep.subr.bf16.mxu0 %v848_v9 }
   0xf   :  { %851 = vmatpush3.bf16.msra.mxu0 %v848_v9 }
  0x10   :  { %14 = vsyncpa [#allocation4], 0  ;;  %853 = vmatprep.subr.bf16.mxu0 %v852_v13  ;;  %v856_v22 = vpack.c.bf16 %v54_v15, %v53_v14  ;;  %v233_v23 = vld [vmem:[%s1189_s3 + $0x20] sm:$0xff]  ;;  %v234_v24 = vld [vmem:[%s1189_s3 + $0x28] sm:$0xff]  ;;  %873 = vmatprep.subr.bf16.mxu1 %v872_v20  ;;  %vm244_vm0 = vcmask 523264   ;;  %vm951_vm1 = vmmov 0  }
  0x11   :  { %v55_v25 = vld [vmem:[%s1187_s1 + $0x50] sm:$0xff]  ;;  %v56_v26 = vld [vmem:[%s1187_s1 + $0x58] sm:$0xff]  ;;  %875 = vmatpush3.bf16.msra.mxu1 %v872_v20  ;;  %v880_v27 = vpack.c.bf16 %v234_v24, %v233_v23  ;;  %v57_v29 = vld [vmem:[%s1187_s1 + $0x60] sm:$0xff]  ;;  %s954_s6 = smov [#allocation3]  }
  0x12   :  { %877 = vmatprep.subr.bf16.mxu1 %v876_v21  ;;  %v860_v28 = vpack.c.bf16 %v56_v26, %v55_v25  ;;  %v58_v30 = vld [vmem:[%s1187_s1 + $0x68] sm:$0xff]  ;;  %v59_v32 = vld [vmem:[%s1187_s1 + $0x70] sm:$0xff]  ;;  %v60_v33 = vld [vmem:[%s1187_s1 + $0x78] sm:$0xff]  ;;  %s593_s11 = sshll.u32 %s954_s6, 4  ;;  %s594_s11 = int_to_ptr.vmem [resolvable:$true] %s593_s11 }
  0x13   :  { %855 = vmatpush3.bf16.msra.mxu0 %v852_v13  ;;  %v864_v31 = vpack.c.bf16 %v58_v30, %v57_v29  ;;  %v868_v34 = vpack.c.bf16 %v60_v33, %v59_v32  ;;  %v30_v35 = vld [vmem:[%s1186_s0 + $0x8] sm:$0xff]  ;;  %v31_v36 = vld [vmem:[%s1186_s0 + $0x10] sm:$0xff]  ;;  %v32_v37 = vld [vmem:[%s1186_s0 + $0x18] sm:$0xff]  ;;  %s926_s12 = scalar_lea.vmem %s594_s11, 16  ;;  %s930_s13 = scalar_lea.vmem %s594_s11, 32 }
  0x14   :  { %857 = vmatprep.subr.bf16.mxu0 %v856_v22  ;;  %v33_v38 = vld [vmem:[%s1186_s0 + $0x20] sm:$0xff]  ;;  %v34_v39 = vld [vmem:[%s1186_s0 + $0x28] sm:$0xff]  ;;  %v35_v40 = vld [vmem:[%s1186_s0 + $0x30] sm:$0xff]  ;;  %p927_p0 = scmp.ne.s32.totalorder %s594_s11, %s926_s12  ;;  %p931_p1 = scmp.lt.s32.totalorder %s594_s11, %s594_s11 }
  0x15   :  { %879 = vmatpush3.bf16.msra.mxu1 %v876_v21  ;;  %v36_v41 = vld [vmem:[%s1186_s0 + $0x38] sm:$0xff]  ;;  %v37_v42 = vld [vmem:[%s1186_s0 + $0x40] sm:$0xff]  ;;  %v38_v43 = vld [vmem:[%s1186_s0 + $0x48] sm:$0xff]  ;;  %p932_p2 = scmp.lt.s32.totalorder %s930_s13, %s926_s12 }
  0x16   :  { %881 = vmatprep.subr.bf16.mxu1 %v880_v27  ;;  %v39_v44 = vld [vmem:[%s1186_s0 + $0x50] sm:$0xff]  ;;  %v40_v45 = vld [vmem:[%s1186_s0 + $0x58] sm:$0xff]  ;;  %v41_v46 = vld [vmem:[%s1186_s0 + $0x60] sm:$0xff] }
  0x17   :  { %859 = vmatpush3.bf16.msra.mxu0 %v856_v22  ;;  %v42_v47 = vld [vmem:[%s1186_s0 + $0x68] sm:$0xff]  ;;  %v43_v48 = vld [vmem:[%s1186_s0 + $0x70] sm:$0xff]  ;;  %v44_v49 = vld [vmem:[%s1186_s0 + $0x78] sm:$0xff]  ;;  %p933_p3 = por %p932_p2, %p931_p1 }
  0x18   :  { %861 = vmatprep.subr.bf16.mxu0 %v860_v28  ;;  %v235_v50 = vld [vmem:[%s1189_s3 + $0x30] sm:$0xff]  ;;  %v236_v51 = vld [vmem:[%s1189_s3 + $0x38] sm:$0xff]  ;;  %v601_v53 = vld [vmem:[%s1188_s2] ss:$0 sm:$0xff] }
  0x19   :  { %883 = vmatpush3.bf16.msra.mxu1 %v880_v27  ;;  %v884_v52 = vpack.c.bf16 %v236_v51, %v235_v50  ;;  %vm1143_vm2 = vmpackc.low %vm244_vm0, %vm244_vm0  ;;  %p934_p4 = pnand %p933_p3, %p927_p0 }
  0x1b   :  { %863 = vmatpush3.bf16.msra.mxu0 %v860_v28  ;;  %885 = vmatprep.subr.bf16.mxu1 %v884_v52 }
  0x1c   :  { %865 = vmatprep.subr.bf16.mxu0 %v864_v31 }
  0x1d   :  { %887 = vmatpush3.bf16.msra.mxu1 %v884_v52 }
  0x1f   :  { %867 = vmatpush3.bf16.msra.mxu0 %v864_v31 }
  0x20   :  { %869 = vmatprep.subr.bf16.mxu0 %v868_v34 }
  0x23   :  { %871 = vmatpush3.bf16.msra.mxu0 %v868_v34 }
  0x26   :  { %742 = vmatmul.mubr.f32.vlgmr.msra.gmra.mrb[0].mxu0 %v30_v35 }
  0x27   :  { %744 = vmatprep.mubr.f32.mxu0 %v31_v36 }
  0x2a   :  { %745 = vmatmul.mubr.f32.gmra.mrb[2].mxu0 %v32_v37 }
  0x2b   :  { %747 = vmatprep.mubr.f32.mxu0 %v33_v38  ;;  %v950_v38 = vmov 0.0|0.0  }
  0x2c   :  { %888 = vmatprep.subr.bf16.mxu1 %v950_v38 }
  0x2e   :  { %748 = vmatmul.mubr.f32.gmra.mrb[4].mxu0 %v34_v39  ;;  %v952_v39 = vmov 0.0  }
  0x2f   :  { %750 = vmatprep.mubr.f32.mxu0 %v35_v40  ;;  %v455_v40 = vld [vmem:[#allocation2] sm:$0x1] }
  0x32   :  { %751 = vmatmul.mubr.f32.gmra.mrb[6].mxu0 %v36_v41  ;;  %v953_v41 = vmov 0  }
  0x33   :  { %753 = vmatprep.mubr.f32.mxu0 %v37_v42  ;;  %925 = vset.pattern.permute.xlu0 %v953_v41  ;;  %v602_v42 = vld [vmem:[%s1190_s4] ss:$0 sm:$0xff] }
  0x34   :  { %458 = vperm.xlu0 %925, %v455_v40  }
  0x36   :  { %754 = vmatmul.mubr.f32.gmra.mrb[8].mxu0 %v38_v43 }
  0x37   :  { %756 = vmatprep.mubr.f32.mxu0 %v39_v44 }
  0x3a   :  { %757 = vmatmul.mubr.f32.gmra.mrb[10].mxu0 %v40_v45 }
  0x3b   :  { %759 = vmatprep.mubr.f32.mxu0 %v41_v46 }
  0x3e   :  { %760 = vmatmul.mubr.f32.gmra.mrb[12].mxu0 %v42_v47 }
  0x3f   :  { %762 = vmatprep.mubr.f32.mxu0 %v43_v48 }
  0x42   :  { %763 = vmatmul.mubr.f32.gmra.mrb[14].mxu0 %v44_v49 }
  0xb3   :  { %v459_v41 = vpop.permute.xlu0 %458 }
  0xf9   :  { %v743_v54 = vpop.f32.mrb[0].mxu0 }
  0xfa   :  { %v140_v55 = vadd.f32 %v743_v54, %v601_v53  ;;  %v134_v56 = vpop.f32.mrb[1].mxu0 }
  0xfb   :  { %v135_v57 = vadd.f32 %v601_v53, %v134_v56 }
  0xfc   :  { %v214_v60 = vmax.f32 %v140_v55, 0.0 }
  0xfd   :  { %v213_v58 = vmax.f32 %v135_v57, 0.0  ;;  %v746_v59 = vpop.f32.mrb[2].mxu0 }
  0xfe   :  { %v150_v61 = vadd.f32 %v746_v59, %v601_v53  ;;  %v144_v62 = vpop.f32.mrb[3].mxu0 }
  0xff   :  { %v145_v63 = vadd.f32 %v601_v53, %v144_v62  ;;  %781 = vmatprep.mubr.msk.f32.mxu1 %vm244_vm0, %v213_v58 }
 0x100   :  { %v216_v0 = vmax.f32 %v150_v61, 0.0  ;;  %782 = vmatmul.mubr.msk.f32.vlgmr.msra.gmra.mrb[0].mxu1 %vm244_vm0, %v214_v60 }
 0x101   :  { %v215_v1 = vmax.f32 %v145_v63, 0.0  ;;  %v749_v2 = vpop.f32.mrb[4].mxu0 }
 0x102   :  { %v160_v3 = vadd.f32 %v749_v2, %v601_v53  ;;  %v154_v4 = vpop.f32.mrb[5].mxu0 }
 0x103   :  { %784 = vmatprep.mubr.msk.f32.mxu1 %vm244_vm0, %v215_v1  ;;  %v155_v5 = vadd.f32 %v601_v53, %v154_v4 }
 0x104   :  { %785 = vmatmul.mubr.msk.f32.gmra.mrb[2].mxu1 %vm244_vm0, %v216_v0  ;;  %v218_v6 = vmax.f32 %v160_v3, 0.0 }
 0x105   :  { %v217_v7 = vmax.f32 %v155_v5, 0.0  ;;  %v752_v8 = vpop.f32.mrb[6].mxu0 }
 0x106   :  { %v170_v9 = vadd.f32 %v752_v8, %v601_v53  ;;  %v164_v10 = vpop.f32.mrb[7].mxu0 }
 0x107   :  { %787 = vmatprep.mubr.msk.f32.mxu1 %vm244_vm0, %v217_v7  ;;  %v165_v11 = vadd.f32 %v601_v53, %v164_v10 }
 0x108   :  { %788 = vmatmul.mubr.msk.f32.gmra.mrb[4].mxu1 %vm244_vm0, %v218_v6  ;;  %v220_v12 = vmax.f32 %v170_v9, 0.0 }
 0x109   :  { %v219_v13 = vmax.f32 %v165_v11, 0.0  ;;  %v755_v14 = vpop.f32.mrb[8].mxu0 }
 0x10a   :  { %v180_v15 = vadd.f32 %v755_v14, %v601_v53  ;;  %v174_v16 = vpop.f32.mrb[9].mxu0 }
 0x10b   :  { %790 = vmatprep.mubr.msk.f32.mxu1 %vm244_vm0, %v219_v13  ;;  %v175_v17 = vadd.f32 %v601_v53, %v174_v16 }
 0x10c   :  { %791 = vmatmul.mubr.msk.f32.gmra.mrb[6].mxu1 %vm244_vm0, %v220_v12  ;;  %v222_v18 = vmax.f32 %v180_v15, 0.0 }
 0x10d   :  { %v221_v19 = vmax.f32 %v175_v17, 0.0  ;;  %v758_v20 = vpop.f32.mrb[10].mxu0 }
 0x10e   :  { %v190_v21 = vadd.f32 %v758_v20, %v601_v53  ;;  %v184_v22 = vpop.f32.mrb[11].mxu0 }
 0x10f   :  { %793 = vmatprep.mubr.msk.f32.mxu1 %vm244_vm0, %v221_v19  ;;  %v185_v23 = vadd.f32 %v601_v53, %v184_v22 }
 0x110   :  { %794 = vmatmul.mubr.msk.f32.gmra.mrb[8].mxu1 %vm244_vm0, %v222_v18  ;;  %v224_v24 = vmax.f32 %v190_v21, 0.0 }
 0x111   :  { %v223_v25 = vmax.f32 %v185_v23, 0.0  ;;  %v761_v26 = vpop.f32.mrb[12].mxu0 }
 0x112   :  { %v200_v27 = vadd.f32 %v761_v26, %v601_v53  ;;  %v194_v28 = vpop.f32.mrb[13].mxu0 }
 0x113   :  { %796 = vmatprep.mubr.msk.f32.mxu1 %vm244_vm0, %v223_v25  ;;  %v195_v29 = vadd.f32 %v601_v53, %v194_v28 }
 0x114   :  { %797 = vmatmul.mubr.msk.f32.gmra.mrb[10].mxu1 %vm244_vm0, %v224_v24  ;;  %v226_v30 = vmax.f32 %v200_v27, 0.0 }
 0x115   :  { %v225_v31 = vmax.f32 %v195_v29, 0.0  ;;  %v764_v32 = vpop.f32.mrb[14].mxu0 }
 0x116   :  { %v210_v33 = vadd.f32 %v764_v32, %v601_v53  ;;  %v204_v34 = vpop.f32.mrb[15].mxu0 }
 0x117   :  { %799 = vmatprep.mubr.msk.f32.mxu1 %vm244_vm0, %v225_v31  ;;  %v205_v35 = vadd.f32 %v601_v53, %v204_v34 }
 0x118   :  { %800 = vmatmul.mubr.msk.f32.gmra.mrb[12].mxu1 %vm244_vm0, %v226_v30  ;;  %v228_v36 = vmax.f32 %v210_v33, 0.0 }
 0x119   :  { %v227_v37 = vmax.f32 %v205_v35, 0.0 }
 0x11b   :  { %802 = vmatprep.mubr.msk.f32.mxu1 %vm244_vm0, %v227_v37  ;;  %v461_v37 = vlaneseq }
 0x11c   :  { %803 = vmatmul.mubr.msk.f32.gmra.mrb[14].mxu1 %vm244_vm0, %v228_v36  ;;  %v454_v36 = vld [vmem:[%s1191_s5] sm:$0x1] }
 0x11d   :  { %837 = vmatprep.mubr.msk.f32.mxu1 %vm951_vm1, %v952_v39  ;;  %v462_v39 = vshrl.u32 %v461_v37, 7 }
 0x11f   :  { %v463_v40 = vsub.s32 0, %v462_v39 }
 0x1d3   :  { %v783_v43 = vpop.f32.mrb[0].mxu1 }
 0x1d4   :  { %v365_v44 = vadd.f32 %v783_v43, %v602_v42  ;;  %v359_v45 = vpop.f32.mrb[1].mxu1 }
 0x1d5   :  { %v360_v46 = vadd.f32 %v602_v42, %v359_v45 }
 0x1d6   :  { %v439_v47 = vmax.f32 %v365_v44, 0.0 }
 0x1d7   :  { %v438_v48 = vmax.f32 %v360_v46, 0.0  ;;  %v786_v49 = vpop.f32.mrb[2].mxu1 }
 0x1d8   :  { %v375_v50 = vadd.f32 %v786_v49, %v602_v42  ;;  %v369_v51 = vpop.f32.mrb[3].mxu1 }
 0x1d9   :  { %v889_v53 = vpack.c.bf16 %v439_v47, %v438_v48  ;;  %v370_v54 = vadd.f32 %v602_v42, %v369_v51 }
 0x1da   :  { %v441_v55 = vmax.f32 %v375_v50, 0.0 }
 0x1db   :  { %v440_v56 = vmax.f32 %v370_v54, 0.0  ;;  %891 = vmatpush3.bf16.xpose.msk.msra.mxu1 %vm1143_vm2, %v889_v53  ;;  %v789_v57 = vpop.f32.mrb[4].mxu1 }
 0x1dc   :  { %v385_v58 = vadd.f32 %v789_v57, %v602_v42  ;;  %v379_v59 = vpop.f32.mrb[5].mxu1  ;;  %892 = vmatprep.subr.bf16.mxu1 %v950_v38 }
 0x1dd   :  { %v893_v60 = vpack.c.bf16 %v441_v55, %v440_v56  ;;  %v380_v61 = vadd.f32 %v602_v42, %v379_v59 }
 0x1de   :  { %v443_v62 = vmax.f32 %v385_v58, 0.0 }
 0x1df   :  { %v442_v63 = vmax.f32 %v380_v61, 0.0  ;;  %v792_v0 = vpop.f32.mrb[6].mxu1 }
 0x1e0   :  { %v395_v1 = vadd.f32 %v792_v0, %v602_v42  ;;  %v389_v2 = vpop.f32.mrb[7].mxu1 }
 0x1e1   :  { %v897_v3 = vpack.c.bf16 %v443_v62, %v442_v63  ;;  %v390_v4 = vadd.f32 %v602_v42, %v389_v2 }
 0x1e2   :  { %v445_v5 = vmax.f32 %v395_v1, 0.0 }
 0x1e3   :  { %895 = vmatpush3.bf16.xpose.msk.msra.mxu1 %vm1143_vm2, %v893_v60  ;;  %v444_v6 = vmax.f32 %v390_v4, 0.0  ;;  %v795_v7 = vpop.f32.mrb[8].mxu1 }
 0x1e4   :  { %896 = vmatprep.subr.bf16.mxu1 %v950_v38  ;;  %v405_v8 = vadd.f32 %v795_v7, %v602_v42  ;;  %v399_v9 = vpop.f32.mrb[9].mxu1 }
 0x1e5   :  { %v901_v10 = vpack.c.bf16 %v445_v5, %v444_v6  ;;  %v400_v11 = vadd.f32 %v602_v42, %v399_v9 }
 0x1e6   :  { %v447_v12 = vmax.f32 %v405_v8, 0.0 }
 0x1e7   :  { %v446_v13 = vmax.f32 %v400_v11, 0.0  ;;  %v798_v14 = vpop.f32.mrb[10].mxu1 }
 0x1e8   :  { %v415_v15 = vadd.f32 %v798_v14, %v602_v42  ;;  %v409_v16 = vpop.f32.mrb[11].mxu1 }
 0x1e9   :  { %v905_v17 = vpack.c.bf16 %v447_v12, %v446_v13  ;;  %v410_v18 = vadd.f32 %v602_v42, %v409_v16 }
 0x1ea   :  { %v449_v19 = vmax.f32 %v415_v15, 0.0 }
 0x1eb   :  { %899 = vmatpush3.bf16.xpose.msk.msra.mxu1 %vm1143_vm2, %v897_v3  ;;  %v448_v20 = vmax.f32 %v410_v18, 0.0  ;;  %v801_v21 = vpop.f32.mrb[12].mxu1 }
 0x1ec   :  { %900 = vmatprep.subr.bf16.mxu1 %v950_v38  ;;  %v425_v22 = vadd.f32 %v801_v21, %v602_v42  ;;  %v419_v23 = vpop.f32.mrb[13].mxu1 }
 0x1ed   :  { %v909_v24 = vpack.c.bf16 %v449_v19, %v448_v20  ;;  %v420_v25 = vadd.f32 %v602_v42, %v419_v23 }
 0x1ee   :  { %v451_v26 = vmax.f32 %v425_v22, 0.0 }
 0x1ef   :  { %v450_v27 = vmax.f32 %v420_v25, 0.0  ;;  %v804_v28 = vpop.f32.mrb[14].mxu1 }
 0x1f0   :  { %v435_v29 = vadd.f32 %v804_v28, %v602_v42  ;;  %v429_v30 = vpop.f32.mrb[15].mxu1 }
 0x1f1   :  { %v913_v31 = vpack.c.bf16 %v451_v26, %v450_v27  ;;  %v430_v32 = vadd.f32 %v602_v42, %v429_v30  ;;  %v464_v42 = vrot.slane %v459_v41, %v463_v40 }
 0x1f2   :  { %v453_v33 = vmax.f32 %v435_v29, 0.0 }
 0x1f3   :  { %903 = vmatpush3.bf16.xpose.msk.msra.mxu1 %vm1143_vm2, %v901_v10  ;;  %v452_v34 = vmax.f32 %v430_v32, 0.0 }
 0x1f4   :  { %904 = vmatprep.subr.bf16.mxu1 %v950_v38 }
 0x1f5   :  { %v917_v35 = vpack.c.bf16 %v453_v33, %v452_v34 }
 0x1fb   :  { %907 = vmatpush3.bf16.xpose.msk.msra.mxu1 %vm1143_vm2, %v905_v17 }
 0x1fc   :  { %908 = vmatprep.subr.bf16.mxu1 %v950_v38 }
 0x203   :  { %911 = vmatpush3.bf16.xpose.msk.msra.mxu1 %vm1143_vm2, %v909_v24 }
 0x204   :  { %912 = vmatprep.subr.bf16.mxu1 %v950_v38 }
 0x20b   :  { %915 = vmatpush3.bf16.xpose.msk.msra.mxu1 %vm1143_vm2, %v913_v31 }
 0x20c   :  { %916 = vmatprep.subr.bf16.mxu1 %v950_v38 }
 0x213   :  { %919 = vmatpush3.bf16.xpose.msk.msra.mxu1 %vm1143_vm2, %v917_v35 }
 0x21a   :  { %838 = vmatmul.mubr.msk.f32.vlgmr.msra.gmra.mrb[16].mxu1 %vm244_vm0, %v454_v36 }
 0x2ed   :  { %v582_v43 = vpop.f32.mrb[16].mxu1 }
 0x2ee   :  { %v583_v44 = vadd.f32 %v582_v43, %v464_v42  ;;  %v839_v45 = vpop.f32.mrb[17].mxu1 }
 0x2f0   :  { %586 = vst [vmem:[#allocation3] sm:$0x1] %v583_v44 }
 0x2f1   :  { %937 = shalt.err (!%p934_p4)
}
 0x2f2   :  { %s938_s15 = scalar_lea.hbm %s1193_s7, 16 }
 0x2f3   :  { %p939_p5 = scmp.ne.s32.totalorder %s1193_s7, %s938_s15  ;;  %p942_p6 = scmp.lt.u32.totalorder %s938_s15, %s1193_s7 }
 0x2f5   :  { %p944_p7 = pnand %p942_p6, %p939_p5 }
 0x2f7   :  { %947 = shalt.err (!%p944_p7)
}
 0x2f8   :  { %596 = dma.vmem_to_hbm [thread:$0]  %s594_s11, 16, %s1193_s7, [#allocation4]  }
 0x2f9   :  { %948 = dma.done.wait [#allocation4], 16  }
 0x2fa   :  { %949 = vsyncadd [#allocation4], 4294967280 }
 0x2fb   :  { %600 = vsyncpa [#allocation4], 1 }

</bundles_post_ra>
